<compile_context>
chip_gen: v7x
topology: tpu7x:2x2x1
jax: 0.10.0
libtpu: 0.0.40
codegen_flags: <defaults>
</compile_context>

<pallas_src>
import functools

import jax
import jax.numpy as jnp
from jax.experimental import pallas as pl
from jax.experimental.pallas import tpu as pltpu

LANE = 128
# Scoped-VMEM request: 48 MiB stays under v7x's 64 MiB physical VMEM per TC
# while raising the 16/32 MiB defaults on v5e/v6e (128 MiB physical there).
VMEM_LIMIT = 48 * 1024 * 1024
# Keep h_in / z_in fully resident in VMEM (read once per kernel instead of
# once per row tile) while their (double-buffered) footprint stays small.
FEAT_RESIDENT_MAX_BYTES = 8 * 1024 * 1024


def _round_up(x, m):
    return ((x + m - 1) // m) * m


def _pad2d(a, rows, cols):
    return jnp.pad(a, ((0, rows - a.shape[0]), (0, cols - a.shape[1])))


def _choose_tiles(N, row_tile, k_tile):
    """Pick (row_tile, k_tile, Np) with Np % k_tile == 0 and k_tile % row_tile == 0.

    Rows are padded only to row_tile (no lcm blow-up); k_tile is the largest
    multiple of row_tile <= the requested k_tile that divides Np. row_tile is
    capped at Np/2 when possible so the "parallel" row axis can split across
    both v7x TensorCores.
    """
    n_unit = _round_up(N, LANE)
    row_tile = max(LANE, min(_round_up(row_tile, LANE), n_unit))
    if n_unit // row_tile < 2 and n_unit >= 2 * LANE:
        row_tile = max(LANE, ((n_unit // 2) // LANE) * LANE)
    Np = _round_up(N, row_tile)
    n_blocks = Np // row_tile
    kb = max(1, min(n_blocks, max(1, k_tile // row_tile)))
    while n_blocks % kb:
        kb -= 1
    return row_tile, kb * row_tile, Np


def _kernel_a_tile(Np, row_tile):
    """Row tile for the tiny X@W0 kernel: as close to 1024 as divides Np."""
    n_blocks = Np // row_tile
    m = max(1, min(n_blocks, max(1, 1024 // row_tile)))
    while n_blocks % m:
        m -= 1
    return row_tile * m


# ---------------------------------------------------------------------------
# Kernel A: h_in = X @ W0           (Mix_Pass layer-0 linear; bias b0 == 0)
# ---------------------------------------------------------------------------
def lin_kernel(x_ref, w_ref, o_ref):
    o_ref[...] = jnp.dot(x_ref[...], w_ref[...],
                         preferred_element_type=jnp.float32).astype(o_ref.dtype)


# ---------------------------------------------------------------------------
# Kernel B: z_in = ReLU(P @ h_in) @ W1
#   grid = (row tiles, K tiles); f32 accumulator in VMEM scratch, init at
#   k==0, ReLU + layer-1 linear (bf16 MXU) fused into the k==last finalize.
#   h_in is VMEM-resident (sliced with pl.ds) unless it is too large.
# ---------------------------------------------------------------------------
def prop_relu_lin_kernel(p_ref, f_ref, w1_ref, o_ref, acc_ref, *, k_tile,
                         feat_resident):
    k = pl.program_id(1)

    @pl.when(k == 0)
    def _():
        acc_ref[...] = jnp.zeros_like(acc_ref)

    if feat_resident:
        start = pl.multiple_of(k * k_tile, k_tile)
        f = f_ref[pl.ds(start, k_tile), :]
    else:
        f = f_ref[...]
    acc_ref[...] += jnp.dot(p_ref[...], f, preferred_element_type=jnp.float32)

    @pl.when(k == pl.num_programs(1) - 1)
    def _():
        h = jnp.maximum(acc_ref[...], 0.0).astype(jnp.bfloat16)        # ReLU
        o_ref[...] = jnp.dot(h, w1_ref[...],
                             preferred_element_type=jnp.float32).astype(o_ref.dtype)


# ---------------------------------------------------------------------------
# Kernel C: zs = P @ z_in ; res = log_softmax(fc2(ELU(fc1(zs))))
#   projection head fused into the finalize branch so it hides under the next
#   row tile's P DMA. Padded class columns are masked to -1e30 before the
#   log-sum-exp (logits stay f32 so the sentinel cannot overflow).
# ---------------------------------------------------------------------------
def prop_head_kernel(p_ref, f_ref, wf1_ref, bf1_ref, wf2_ref, bf2_ref,
                     zs_ref, res_ref, acc_ref, *, k_tile, feat_resident,
                     num_classes):
    k = pl.program_id(1)

    @pl.when(k == 0)
    def _():
        acc_ref[...] = jnp.zeros_like(acc_ref)

    if feat_resident:
        start = pl.multiple_of(k * k_tile, k_tile)
        f = f_ref[pl.ds(start, k_tile), :]
    else:
        f = f_ref[...]
    acc_ref[...] += jnp.dot(p_ref[...], f, preferred_element_type=jnp.float32)

    @pl.when(k == pl.num_programs(1) - 1)
    def _():
        zs = acc_ref[...]
        zs_ref[...] = zs

        # fc1 + ELU(alpha=1)      (dropout = identity in eval mode)
        p1 = jnp.dot(zs.astype(jnp.bfloat16), wf1_ref[...],
                     preferred_element_type=jnp.float32) + bf1_ref[...]
        p1 = jnp.where(p1 > 0.0, p1, jnp.exp(jnp.minimum(p1, 0.0)) - 1.0)

        # fc2 + masked log_softmax over the real class columns
        logits = jnp.dot(p1.astype(jnp.bfloat16), wf2_ref[...],
                         preferred_element_type=jnp.float32) + bf2_ref[...]
        col = jax.lax.broadcasted_iota(jnp.int32, logits.shape, 1)
        logits = jnp.where(col < num_classes, logits,
                           jnp.full_like(logits, -1e30))
        m = jnp.max(logits, axis=1, keepdims=True)
        lse = jnp.log(jnp.sum(jnp.exp(logits - m), axis=1, keepdims=True)) + m
        res_ref[...] = logits - lse


# ---------------------------------------------------------------------------
# Plain-JAX glue: sparse edge_index -> dense normalized propagation matrix.
# ---------------------------------------------------------------------------
def build_prop_matrix(edge_index, edge_weight, num_nodes, high_pass,
                      dtype=jnp.bfloat16):
    row, col = edge_index[0], edge_index[1]
    if edge_weight is None:
        edge_weight = jnp.ones(row.shape[0], dtype=jnp.float32)
    # A_dense[target, source] so that out = P @ x aggregates messages from
    # sources into targets (PyG flow='source_to_target', aggr='add').
    A = jnp.zeros((num_nodes, num_nodes), dtype=jnp.float32)
    A = A.at[col, row].add(edge_weight)
    A = A + jnp.eye(num_nodes, dtype=jnp.float32)        # add_self_loops (fill 1)
    deg = A.sum(axis=1)
    d_inv_sqrt = jnp.where(deg > 0.0, jax.lax.rsqrt(deg), 0.0)
    P_low = d_inv_sqrt[:, None] * A * d_inv_sqrt[None, :]
    if high_pass:
        # TODO(synk): PyG get_laplacian('sym') computes degrees from the source
        # scatter; identical here because the caller symmetrizes edge_index.
        P_low = jnp.eye(num_nodes, dtype=jnp.float32) - P_low
    return P_low.astype(dtype)


# ---------------------------------------------------------------------------
# Forward wrapper.
# ---------------------------------------------------------------------------
def hlcl_forward(x, edge_index, params, edge_weight=None, high_pass=False,
                 row_tile=512, k_tile=2048):
    w0, b0, w1, b1, wf1, bf1, wf2, bf2 = params
    # Mix_Pass biases are zeroed in reset_parameters(); drop the known-zero adds.
    del b0, b1

    N, in_dim = x.shape
    hidden = w0.shape[1]
    proj = wf1.shape[1]
    out_dim = wf2.shape[1]

    row_tile, k_tile, Np = _choose_tiles(N, row_tile, k_tile)
    Fp = _round_up(in_dim, LANE)
    Hp = _round_up(hidden, LANE)
    Pp = _round_up(proj, LANE)
    Op = _round_up(out_dim, LANE)

    # P (read twice, dominates HBM traffic) is built & padded directly in bf16.
    P = _pad2d(build_prop_matrix(edge_index, edge_weight, N, high_pass,
                                 dtype=jnp.bfloat16), Np, Np)
    Xp = _pad2d(x.astype(jnp.float32), Np, Fp)
    W0p = _pad2d(w0, Fp, Hp)
    # Epilogue matmul weights pre-cast to bf16 (MXU rate + half the VMEM).
    W1p = _pad2d(w1, Hp, Hp).astype(jnp.bfloat16)
    Wf1p = _pad2d(wf1, Hp, Pp).astype(jnp.bfloat16)
    bf1p = _pad2d(bf1.reshape(1, -1), 1, Pp)
    Wf2p = _pad2d(wf2, Pp, Op).astype(jnp.bfloat16)
    bf2p = _pad2d(bf2.reshape(1, -1), 1, Op)

    n_row = Np // row_tile
    n_k = Np // k_tile

    feat_resident = Np * Hp * 2 <= FEAT_RESIDENT_MAX_BYTES
    feat_bytes = Np * Hp * 2 if feat_resident else Np * Hp * 2 * n_row
    if feat_resident:
        # Whole feature matrix lives in VMEM; constant block index => one DMA.
        feat_spec = pl.BlockSpec((Np, Hp), lambda i, k: (0, 0))
    else:
        # Fallback: stream the k-chunk per grid step (re-read n_row times).
        feat_spec = pl.BlockSpec((k_tile, Hp), lambda i, k: (k, 0))

    cparams_lin = pltpu.CompilerParams(
        dimension_semantics=("parallel",), vmem_limit_bytes=VMEM_LIMIT)
    cparams_prop = pltpu.CompilerParams(
        dimension_semantics=("parallel", "arbitrary"),  # row tiles across v7x TCs
        vmem_limit_bytes=VMEM_LIMIT)

    # ---- kernel A: h_in = X @ W0  (tiny; large row tile per perf review) ----
    a_tile = _kernel_a_tile(Np, row_tile)
    h_in = pl.pallas_call(
        lin_kernel,
        out_shape=jax.ShapeDtypeStruct((Np, Hp), jnp.bfloat16),
        grid=(Np // a_tile,),
        in_specs=[pl.BlockSpec((a_tile, Fp), lambda i: (i, 0)),
                  pl.BlockSpec((Fp, Hp), lambda i: (0, 0))],
        out_specs=pl.BlockSpec((a_tile, Hp), lambda i: (i, 0)),
        compiler_params=cparams_lin,
        cost_estimate=pl.CostEstimate(
            flops=2 * Np * Fp * Hp, transcendentals=0,
            bytes_accessed=Np * Fp * 4 + Fp * Hp * 4 + Np * Hp * 2),
    )(Xp, W0p)

    # ---- kernel B: z_in = ReLU(P @ h_in) @ W1  (P stream #1) ----
    z_in = pl.pallas_call(
        functools.partial(prop_relu_lin_kernel, k_tile=k_tile,
                          feat_resident=feat_resident),
        out_shape=jax.ShapeDtypeStruct((Np, Hp), jnp.bfloat16),
        grid=(n_row, n_k),
        in_specs=[pl.BlockSpec((row_tile, k_tile), lambda i, k: (i, k)),  # P tile
                  feat_spec,                                              # h_in
                  pl.BlockSpec((Hp, Hp), lambda i, k: (0, 0))],           # W1 resident
        out_specs=pl.BlockSpec((row_tile, Hp), lambda i, k: (i, 0)),
        scratch_shapes=[pltpu.VMEM((row_tile, Hp), jnp.float32)],
        compiler_params=cparams_prop,
        cost_estimate=pl.CostEstimate(
            flops=2 * Np * Np * Hp + 2 * Np * Hp * Hp,
            transcendentals=0,
            bytes_accessed=Np * Np * 2 + feat_bytes + Hp * Hp * 2 + Np * Hp * 2),
    )(P, h_in, W1p)

    # ---- kernel C: zs = P @ z_in ; res = head(zs)  (P stream #2) ----
    zs_p, res_p = pl.pallas_call(
        functools.partial(prop_head_kernel, k_tile=k_tile,
                          feat_resident=feat_resident, num_classes=out_dim),
        out_shape=(jax.ShapeDtypeStruct((Np, Hp), jnp.float32),
                   jax.ShapeDtypeStruct((Np, Op), jnp.float32)),
        grid=(n_row, n_k),
        in_specs=[pl.BlockSpec((row_tile, k_tile), lambda i, k: (i, k)),  # P tile
                  feat_spec,                                              # z_in
                  pl.BlockSpec((Hp, Pp), lambda i, k: (0, 0)),            # fc1 W
                  pl.BlockSpec((1, Pp), lambda i, k: (0, 0)),             # fc1 b
                  pl.BlockSpec((Pp, Op), lambda i, k: (0, 0)),            # fc2 W
                  pl.BlockSpec((1, Op), lambda i, k: (0, 0))],            # fc2 b
        out_specs=(pl.BlockSpec((row_tile, Hp), lambda i, k: (i, 0)),
                   pl.BlockSpec((row_tile, Op), lambda i, k: (i, 0))),
        scratch_shapes=[pltpu.VMEM((row_tile, Hp), jnp.float32)],
        compiler_params=cparams_prop,
        cost_estimate=pl.CostEstimate(
            flops=2 * Np * Np * Hp + 2 * Np * Hp * Pp + 2 * Np * Pp * Op,
            transcendentals=Np * (Pp + Op),
            bytes_accessed=(Np * Np * 2 + feat_bytes
                            + (Hp * Pp + Pp * Op) * 2 + (Pp + Op) * 4
                            + Np * (Hp + Op) * 4)),
    )(P, z_in, Wf1p, bf1p, Wf2p, bf2p)

    return zs_p[:N, :hidden], res_p[:N, :out_dim]


# ---------------------------------------------------------------------------
# Plain-JAX f32 reference (for tolerance checking against the bf16-P kernels).
# ---------------------------------------------------------------------------
def hlcl_forward_ref(x, edge_index, params, edge_weight=None, high_pass=False):
    w0, b0, w1, b1, wf1, bf1, wf2, bf2 = params
    P = build_prop_matrix(edge_index, edge_weight, x.shape[0], high_pass,
                          dtype=jnp.float32)
    z = jnp.maximum(P @ (x @ w0) + b0, 0.0)
    zs = P @ (z @ w1) + b1
    p1 = zs @ wf1 + bf1
    p1 = jnp.where(p1 > 0.0, p1, jnp.exp(jnp.minimum(p1, 0.0)) - 1.0)   # ELU
    logits = p1 @ wf2 + bf2
    res = logits - jax.scipy.special.logsumexp(logits, axis=1, keepdims=True)
    return zs, res


def init_params(key, input_dim, hidden_dim, proj_dim, output_dim):
    """Deterministic synthetic init (PyTorch Linear-style uniform bounds).
    Mix_Pass biases are zeroed, matching reset_parameters()."""
    ks = jax.random.split(key, 6)

    def lin_w(k, fan_in, fan_out):
        bound = 1.0 / jnp.sqrt(fan_in)
        # stored as [in, out] so the kernels do x @ W (== x @ W_pt.T)
        return jax.random.uniform(k, (fan_in, fan_out), jnp.float32, -bound, bound)

    def lin_b(k, fan_in, fan_out):
        bound = 1.0 / jnp.sqrt(fan_in)
        return jax.random.uniform(k, (fan_out,), jnp.float32, -bound, bound)

    w0 = lin_w(ks[0], input_dim, hidden_dim)
    b0 = jnp.zeros((hidden_dim,), jnp.float32)          # Mix_Pass.bias.zero_()
    w1 = lin_w(ks[1], hidden_dim, hidden_dim)
    b1 = jnp.zeros((hidden_dim,), jnp.float32)
    wf1 = lin_w(ks[2], hidden_dim, proj_dim)
    bf1 = lin_b(ks[3], hidden_dim, proj_dim)
    wf2 = lin_w(ks[4], proj_dim, output_dim)
    bf2 = lin_b(ks[5], proj_dim, output_dim)
    return (w0, b0, w1, b1, wf1, bf1, wf2, bf2)


if __name__ == "__main__":
    # N=200 is deliberately not a multiple of 128 so the padding path is hit.
    N, input_dim, hidden_dim, proj_dim, output_dim = 200, 16, 32, 32, 16
    num_edges = 400

    key = jax.random.PRNGKey(0)
    kx, ke1, ke2, kp = jax.random.split(key, 4)

    x = jax.random.normal(kx, (N, input_dim), dtype=jnp.float32)

    # deterministic random graph, symmetrized
    src = jax.random.randint(ke1, (num_edges,), 0, N)
    dst = jax.random.randint(ke2, (num_edges,), 0, N)
    edge_index = jnp.stack([jnp.concatenate([src, dst]),
                            jnp.concatenate([dst, src])])   # [2, 2E]

    params = init_params(kp, input_dim, hidden_dim, proj_dim, output_dim)

    # TODO(synk): F.dropout with training=True is stochastic; implemented as
    # eval-mode identity here.
    # 1) default (auto) tiles: (2 row tiles, 1 k tile) at this size
    zs, res = hlcl_forward(x, edge_index, params, high_pass=False)
    jax.block_until_ready((zs, res))

    # 2) small explicit tiles: forces a (2, 2) grid so the k-reduction
    #    accumulator and the resident-feature pl.ds slicing are exercised
    zs2, res2 = hlcl_forward(x, edge_index, params, high_pass=False,
                             row_tile=128, k_tile=128)
    jax.block_until_ready((zs2, res2))

    # 3) high-pass (sym Laplacian) branch
    zs_hp, res_hp = hlcl_forward(x, edge_index, params, high_pass=True,
                                 row_tile=128, k_tile=128)
    jax.block_until_ready((zs_hp, res_hp))

    assert zs.shape == (N, hidden_dim) and res.shape == (N, output_dim)
    assert zs_hp.shape == (N, hidden_dim) and res_hp.shape == (N, output_dim)
    assert bool(jnp.all(jnp.isfinite(zs))) and bool(jnp.all(jnp.isfinite(res)))
    assert bool(jnp.all(jnp.isfinite(zs_hp))) and bool(jnp.all(jnp.isfinite(res_hp)))
    # masked log_softmax rows must normalize to 1 over the real classes
    assert bool(jnp.allclose(jnp.sum(jnp.exp(res), axis=1), 1.0, atol=1e-3))
    assert bool(jnp.allclose(jnp.sum(jnp.exp(res_hp), axis=1), 1.0, atol=1e-3))
    # both tile configs must agree (bf16/accumulation-order tolerance)
    assert bool(jnp.allclose(zs, zs2, atol=5e-2, rtol=5e-2))
    assert bool(jnp.allclose(res, res2, atol=5e-2, rtol=5e-2))

    # compare against a pure-JAX f32 reference (bf16 P => loose tolerance)
    zs_ref, res_ref = hlcl_forward_ref(x, edge_index, params, high_pass=False)
    zs_hp_ref, res_hp_ref = hlcl_forward_ref(x, edge_index, params, high_pass=True)
    assert float(jnp.max(jnp.abs(zs - zs_ref))) < 1e-1
    assert float(jnp.max(jnp.abs(res - res_ref))) < 1e-1
    assert float(jnp.max(jnp.abs(zs_hp - zs_hp_ref))) < 1e-1
    assert float(jnp.max(jnp.abs(res_hp - res_hp_ref))) < 1e-1

    print("KERNEL_OK")
</pallas_src>

<mosaic_0001>
module attributes {stable_mosaic.version = 11 : i64} {
  func.func @lin_kernel(%arg0: i32, %arg1: memref<256x128xf32, #tpu.memory_space<vmem>>, %arg2: memref<128x128xf32, #tpu.memory_space<vmem>>, %arg3: memref<256x128xbf16, #tpu.memory_space<vmem>>) attributes {dimension_semantics = [#tpu.dimension_semantics<parallel>], iteration_bounds = array<i64: 1>, scalar_prefetch = 0 : i64, scratch_operands = 0 : i64, tpu.core_type = #tpu.core_type<tc>, window_params = [{transform_indices = @transform_0, window_bounds = array<i64: 256, 128>}, {pipeline_mode = #tpu.pipeline_mode<synchronous>, transform_indices = @transform_1, window_bounds = array<i64: 128, 128>}, {transform_indices = @transform_2, window_bounds = array<i64: 256, 128>}]} {
    %c0 = arith.constant 0 : index
    %c0_0 = arith.constant 0 : index
    %0 = vector.load %arg1[%c0, %c0_0] : memref<256x128xf32, #tpu.memory_space<vmem>>, vector<256x128xf32>
    %c0_1 = arith.constant 0 : index
    %c0_2 = arith.constant 0 : index
    %1 = vector.load %arg2[%c0_1, %c0_2] : memref<128x128xf32, #tpu.memory_space<vmem>>, vector<128x128xf32>
    %cst = arith.constant dense<0.000000e+00> : vector<256x128xf32>
    %2 = tpu.matmul %0, %1, %cst {dimension_numbers = #tpu.dot_dimension_numbers<[1], [0], [0], [1], [0, 0, 1, 1], [], []>} : vector<256x128xf32>, vector<128x128xf32>, vector<256x128xf32> -> vector<256x128xf32>
    %3 = arith.truncf %2 : vector<256x128xf32> to vector<256x128xbf16>
    %c0_3 = arith.constant 0 : index
    %c0_4 = arith.constant 0 : index
    %4 = vector.load %arg3[%c0_3, %c0_4] : memref<256x128xbf16, #tpu.memory_space<vmem>>, vector<256x128xbf16>
    tpu.vector_store %arg3[%c0_3, %c0_4], %3 {strides = array<i32>} : memref<256x128xbf16, #tpu.memory_space<vmem>>, vector<256x128xbf16>,
    return
  }
  func.func @transform_0(%arg0: i32) -> (i32, i32) {
    %c0_i32 = arith.constant 0 : i32
    %c0_i32_0 = arith.constant 0 : i32
    return %arg0, %c0_i32 : i32, i32
  }
  func.func @transform_1(%arg0: i32) -> (i32, i32) {
    %c0_i32 = arith.constant 0 : i32
    %c0_i32_0 = arith.constant 0 : i32
    %c0_i32_1 = arith.constant 0 : i32
    return %c0_i32, %c0_i32_0 : i32, i32
  }
  func.func @transform_2(%arg0: i32) -> (i32, i32) {
    %c0_i32 = arith.constant 0 : i32
    %c0_i32_0 = arith.constant 0 : i32
    return %arg0, %c0_i32 : i32, i32
  }
}

</mosaic_0001>

<bundles_post_ra>
// kernel: tpu_custom_call.1
= control target key start
LH: loop header
LB: loop body
LE: loop exit
PB: predicated region body
PF: predicated region fallthrough
CT: control target
= control target key end

     0   :  { %7 = vsyncpa [#allocation3], 0  ;;  %s963_s0 = inlined_call_operand.hbm [shape: f32[256,128], index: 0, kind: input, shape index: {}]   ;;  %s964_s1 = inlined_call_operand.hbm [shape: f32[128,128], index: 1, kind: input, shape index: {}]   ;;  %s965_s2 = inlined_call_operand.hbm [shape: bf16[256,128], index: 2, kind: output, shape index: {}]  }
   0x1   :  { %8 = vsyncpa [#allocation6], 0 }
   0x2   :  { %9 = vsyncpa [#allocation4], 0  ;;  %s905_s9 = smov [#allocation2]   ;;  %s833_s13 = scalar_lea.hbm %s963_s0, 4096 }
   0x3   :  { %s15_s10 = sshll.u32 %s905_s9, 4  ;;  %p834_p0 = scmp.ne.s32.totalorder %s963_s0, %s833_s13  ;;  %s16_s10 = int_to_ptr.vmem [resolvable:$true] %s15_s10 }
   0x4   :  { %p837_p1 = scmp.lt.u32.totalorder %s833_s13, %s963_s0 }
   0x6   :  { %p839_p2 = pnand %p837_p1, %p834_p0 }
   0x8   :  { %842 = shalt.err (!%p839_p2)
}
   0x9   :  { %s843_s18 = scalar_lea.vmem %s16_s10, 4096  ;;  %p848_p4 = scmp.lt.s32.totalorder %s16_s10, %s16_s10 }
   0xa   :  { %p844_p3 = scmp.ne.s32.totalorder %s16_s10, %s843_s18  ;;  %p849_p5 = scmp.lt.s32.totalorder %s843_s18, %s843_s18 }
   0xc   :  { %p850_p6 = por %p849_p5, %p848_p4 }
   0xe   :  { %p851_p7 = pnand %p850_p6, %p844_p3 }
  0x10   :  { %854 = shalt.err (!%p851_p7)
}
  0x11   :  { %s906_s19 = smov 128   ;;  %s907_s20 = smov 8  }
  0x12   :  { %21 = dma.hbm_to_vmem [thread:$0]  %s963_s0, 4096, %s16_s10, [#allocation3], %s906_s19, %s906_s19, %s907_s20  }
  0x13   :  { %s908_s23 = smov [#allocation5]   ;;  %s855_s27 = scalar_lea.hbm %s964_s1, 2048 }
  0x14   :  { %s27_s24 = sshll.u32 %s908_s23, 4  ;;  %p856_p8 = scmp.ne.s32.totalorder %s964_s1, %s855_s27  ;;  %s28_s24 = int_to_ptr.vmem [resolvable:$true] %s27_s24 }
  0x15   :  { %p859_p9 = scmp.lt.u32.totalorder %s855_s27, %s964_s1 }
  0x17   :  { %p861_p10 = pnand %p859_p9, %p856_p8 }
  0x19   :  { %864 = shalt.err (!%p861_p10)
}
  0x1a   :  { %s865_s4 = scalar_lea.vmem %s28_s24, 2048  ;;  %p870_p12 = scmp.lt.s32.totalorder %s28_s24, %s28_s24 }
  0x1b   :  { %p866_p11 = scmp.ne.s32.totalorder %s28_s24, %s865_s4  ;;  %p871_p13 = scmp.lt.s32.totalorder %s865_s4, %s865_s4 }
  0x1d   :  { %p872_p0 = por %p871_p13, %p870_p12 }
  0x1f   :  { %p873_p1 = pnand %p872_p0, %p866_p11 }
  0x21   :  { %876 = shalt.err (!%p873_p1)
}
  0x22   :  { %33 = dma.hbm_to_vmem [thread:$0]  %s964_s1, 2048, %s28_s24, [#allocation6], %s906_s19, %s906_s19, %s907_s20  }
  0x23   :  { %899 = dma.done.wait [#allocation3], 4096  }
  0x24   :  { %900 = vsyncadd [#allocation3], 4294963200 }
  0x25   :  { %901 = dma.done.wait [#allocation6], 2048  }
  0x26   :  { %902 = vsyncadd [#allocation6], 4294965248  ;;  %v72_v0 = vld [vmem:[#allocation5] sm:$0xff]  ;;  %v73_v1 = vld [vmem:[#allocation5 + $0x8] sm:$0xff]  ;;  %s909_s1 = smov [#allocation7]  }
  0x27   :  { %v74_v2 = vld [vmem:[#allocation5 + $0x10] sm:$0xff]  ;;  %v778_v3 = vpack.c.bf16 %v73_v1, %v72_v0  ;;  %v75_v4 = vld [vmem:[#allocation5 + $0x18] sm:$0xff]  ;;  %v76_v6 = vld [vmem:[#allocation5 + $0x20] sm:$0xff]  ;;  %s478_s6 = sshll.u32 %s909_s1, 4  ;;  %s479_s6 = int_to_ptr.vmem [resolvable:$true] %s478_s6 }
  0x28   :  { %v782_v5 = vpack.c.bf16 %v75_v4, %v74_v2  ;;  %v77_v7 = vld [vmem:[#allocation5 + $0x28] sm:$0xff]  ;;  %v40_v9 = vld [vmem:[#allocation2] sm:$0xff]  ;;  %v78_v11 = vld [vmem:[#allocation5 + $0x30] sm:$0xff]  ;;  %s877_s7 = scalar_lea.vmem %s479_s6, 2048  ;;  %p882_p3 = scmp.lt.s32.totalorder %s479_s6, %s479_s6 }
  0x29   :  { %779 = vmatprep.subr.bf16.mxu0 %v778_v3  ;;  %810 = vmatprep.subr.bf16.mxu1 %v778_v3  ;;  %v786_v8 = vpack.c.bf16 %v77_v7, %v76_v6  ;;  %v56_v10 = vld [vmem:[#allocation2 + $0x80] sm:$0xff]  ;;  %v79_v12 = vld [vmem:[#allocation5 + $0x38] sm:$0xff]  ;;  %v81_v15 = vld [vmem:[#allocation5 + $0x48] sm:$0xff]  ;;  %p878_p2 = scmp.ne.s32.totalorder %s479_s6, %s877_s7  ;;  %p883_p4 = scmp.lt.s32.totalorder %s877_s7, %s877_s7 }
  0x2a   :  { %781 = vmatpush3.bf16.msra.mxu0 %v778_v3  ;;  %818 = vmatpush3.bf16.msra.mxu1 %v778_v3  ;;  %v790_v13 = vpack.c.bf16 %v79_v12, %v78_v11  ;;  %v80_v14 = vld [vmem:[#allocation5 + $0x40] sm:$0xff]  ;;  %v82_v17 = vld [vmem:[#allocation5 + $0x50] sm:$0xff]  ;;  %v83_v18 = vld [vmem:[#allocation5 + $0x58] sm:$0xff] }
  0x2b   :  { %783 = vmatprep.subr.bf16.mxu0 %v782_v5  ;;  %811 = vmatprep.subr.bf16.mxu1 %v782_v5  ;;  %v794_v16 = vpack.c.bf16 %v81_v15, %v80_v14  ;;  %v798_v19 = vpack.c.bf16 %v83_v18, %v82_v17  ;;  %v84_v20 = vld [vmem:[#allocation5 + $0x60] sm:$0xff]  ;;  %v85_v21 = vld [vmem:[#allocation5 + $0x68] sm:$0xff]  ;;  %v86_v23 = vld [vmem:[#allocation5 + $0x70] sm:$0xff]  ;;  %p884_p5 = por %p883_p4, %p882_p3 }
  0x2c   :  { %730 = vmatprep.mubr.f32.mxu0 %v40_v9  ;;  %754 = vmatprep.mubr.f32.mxu1 %v56_v10  ;;  %v802_v22 = vpack.c.bf16 %v85_v21, %v84_v20  ;;  %v87_v24 = vld [vmem:[#allocation5 + $0x78] sm:$0xff]  ;;  %v41_v26 = vld [vmem:[#allocation2 + $0x8] sm:$0xff]  ;;  %v42_v28 = vld [vmem:[#allocation2 + $0x10] sm:$0xff] }
  0x2d   :  { %v806_v25 = vpack.c.bf16 %v87_v24, %v86_v23  ;;  %v57_v27 = vld [vmem:[#allocation2 + $0x88] sm:$0xff]  ;;  %v58_v29 = vld [vmem:[#allocation2 + $0x90] sm:$0xff]  ;;  %v43_v30 = vld [vmem:[#allocation2 + $0x18] sm:$0xff]  ;;  %p885_p6 = pnand %p884_p5, %p878_p2 }
  0x2e   :  { %785 = vmatpush3.bf16.msra.mxu0 %v782_v5  ;;  %819 = vmatpush3.bf16.msra.mxu1 %v782_v5  ;;  %v59_v31 = vld [vmem:[#allocation2 + $0x98] sm:$0xff]  ;;  %v44_v32 = vld [vmem:[#allocation2 + $0x20] sm:$0xff]  ;;  %v45_v34 = vld [vmem:[#allocation2 + $0x28] sm:$0xff] }
  0x2f   :  { %787 = vmatprep.subr.bf16.mxu0 %v786_v8  ;;  %812 = vmatprep.subr.bf16.mxu1 %v786_v8  ;;  %v60_v33 = vld [vmem:[#allocation2 + $0xa0] sm:$0xff]  ;;  %v61_v35 = vld [vmem:[#allocation2 + $0xa8] sm:$0xff]  ;;  %v46_v36 = vld [vmem:[#allocation2 + $0x30] sm:$0xff] }
  0x30   :  { %v62_v37 = vld [vmem:[#allocation2 + $0xb0] sm:$0xff]  ;;  %v47_v38 = vld [vmem:[#allocation2 + $0x38] sm:$0xff]  ;;  %v48_v40 = vld [vmem:[#allocation2 + $0x40] sm:$0xff] }
  0x31   :  { %v63_v39 = vld [vmem:[#allocation2 + $0xb8] sm:$0xff]  ;;  %v64_v41 = vld [vmem:[#allocation2 + $0xc0] sm:$0xff]  ;;  %v49_v42 = vld [vmem:[#allocation2 + $0x48] sm:$0xff] }
  0x32   :  { %789 = vmatpush3.bf16.msra.mxu0 %v786_v8  ;;  %820 = vmatpush3.bf16.msra.mxu1 %v786_v8  ;;  %v65_v43 = vld [vmem:[#allocation2 + $0xc8] sm:$0xff]  ;;  %v50_v44 = vld [vmem:[#allocation2 + $0x50] sm:$0xff]  ;;  %v51_v46 = vld [vmem:[#allocation2 + $0x58] sm:$0xff] }
  0x33   :  { %791 = vmatprep.subr.bf16.mxu0 %v790_v13  ;;  %813 = vmatprep.subr.bf16.mxu1 %v790_v13  ;;  %v66_v45 = vld [vmem:[#allocation2 + $0xd0] sm:$0xff]  ;;  %v67_v47 = vld [vmem:[#allocation2 + $0xd8] sm:$0xff]  ;;  %v52_v48 = vld [vmem:[#allocation2 + $0x60] sm:$0xff] }
  0x34   :  { %v68_v49 = vld [vmem:[#allocation2 + $0xe0] sm:$0xff]  ;;  %v53_v50 = vld [vmem:[#allocation2 + $0x68] sm:$0xff]  ;;  %v54_v52 = vld [vmem:[#allocation2 + $0x70] sm:$0xff] }
  0x35   :  { %v69_v51 = vld [vmem:[#allocation2 + $0xe8] sm:$0xff]  ;;  %v70_v53 = vld [vmem:[#allocation2 + $0xf0] sm:$0xff]  ;;  %v55_v54 = vld [vmem:[#allocation2 + $0x78] sm:$0xff] }
  0x36   :  { %793 = vmatpush3.bf16.msra.mxu0 %v790_v13  ;;  %821 = vmatpush3.bf16.msra.mxu1 %v790_v13  ;;  %v71_v55 = vld [vmem:[#allocation2 + $0xf8] sm:$0xff] }
  0x37   :  { %795 = vmatprep.subr.bf16.mxu0 %v794_v16  ;;  %814 = vmatprep.subr.bf16.mxu1 %v794_v16 }
  0x3a   :  { %797 = vmatpush3.bf16.msra.mxu0 %v794_v16  ;;  %822 = vmatpush3.bf16.msra.mxu1 %v794_v16 }
  0x3b   :  { %799 = vmatprep.subr.bf16.mxu0 %v798_v19  ;;  %815 = vmatprep.subr.bf16.mxu1 %v798_v19 }
  0x3e   :  { %801 = vmatpush3.bf16.msra.mxu0 %v798_v19  ;;  %823 = vmatpush3.bf16.msra.mxu1 %v798_v19 }
  0x3f   :  { %803 = vmatprep.subr.bf16.mxu0 %v802_v22  ;;  %816 = vmatprep.subr.bf16.mxu1 %v802_v22 }
  0x42   :  { %805 = vmatpush3.bf16.msra.mxu0 %v802_v22  ;;  %824 = vmatpush3.bf16.msra.mxu1 %v802_v22 }
  0x43   :  { %807 = vmatprep.subr.bf16.mxu0 %v806_v25  ;;  %817 = vmatprep.subr.bf16.mxu1 %v806_v25 }
  0x46   :  { %809 = vmatpush3.bf16.msra.mxu0 %v806_v25  ;;  %825 = vmatpush3.bf16.msra.mxu1 %v806_v25 }
  0x49   :  { %731 = vmatmul.mubr.f32.vlgmr.msra.gmra.mrb[0].mxu0 %v41_v26  ;;  %755 = vmatmul.mubr.f32.vlgmr.msra.gmra.mrb[0].mxu1 %v57_v27 }
  0x4a   :  { %733 = vmatprep.mubr.f32.mxu0 %v42_v28  ;;  %757 = vmatprep.mubr.f32.mxu1 %v58_v29 }
  0x4d   :  { %734 = vmatmul.mubr.f32.gmra.mrb[2].mxu0 %v43_v30  ;;  %758 = vmatmul.mubr.f32.gmra.mrb[2].mxu1 %v59_v31 }
  0x4e   :  { %736 = vmatprep.mubr.f32.mxu0 %v44_v32  ;;  %760 = vmatprep.mubr.f32.mxu1 %v60_v33 }
  0x51   :  { %737 = vmatmul.mubr.f32.gmra.mrb[4].mxu0 %v45_v34  ;;  %761 = vmatmul.mubr.f32.gmra.mrb[4].mxu1 %v61_v35 }
  0x52   :  { %739 = vmatprep.mubr.f32.mxu0 %v46_v36  ;;  %763 = vmatprep.mubr.f32.mxu1 %v62_v37 }
  0x55   :  { %740 = vmatmul.mubr.f32.gmra.mrb[6].mxu0 %v47_v38  ;;  %764 = vmatmul.mubr.f32.gmra.mrb[6].mxu1 %v63_v39 }
  0x56   :  { %742 = vmatprep.mubr.f32.mxu0 %v48_v40  ;;  %766 = vmatprep.mubr.f32.mxu1 %v64_v41 }
  0x59   :  { %743 = vmatmul.mubr.f32.gmra.mrb[8].mxu0 %v49_v42  ;;  %767 = vmatmul.mubr.f32.gmra.mrb[8].mxu1 %v65_v43 }
  0x5a   :  { %745 = vmatprep.mubr.f32.mxu0 %v50_v44  ;;  %769 = vmatprep.mubr.f32.mxu1 %v66_v45 }
  0x5d   :  { %746 = vmatmul.mubr.f32.gmra.mrb[10].mxu0 %v51_v46  ;;  %770 = vmatmul.mubr.f32.gmra.mrb[10].mxu1 %v67_v47 }
  0x5e   :  { %748 = vmatprep.mubr.f32.mxu0 %v52_v48  ;;  %772 = vmatprep.mubr.f32.mxu1 %v68_v49 }
  0x61   :  { %749 = vmatmul.mubr.f32.gmra.mrb[12].mxu0 %v53_v50  ;;  %773 = vmatmul.mubr.f32.gmra.mrb[12].mxu1 %v69_v51 }
  0x62   :  { %751 = vmatprep.mubr.f32.mxu0 %v54_v52  ;;  %775 = vmatprep.mubr.f32.mxu1 %v70_v53 }
  0x65   :  { %752 = vmatmul.mubr.f32.gmra.mrb[14].mxu0 %v55_v54  ;;  %776 = vmatmul.mubr.f32.gmra.mrb[14].mxu1 %v71_v55 }
 0x11c   :  { %v732_v56 = vpop.f32.mrb[0].mxu0  ;;  %v756_v57 = vpop.f32.mrb[0].mxu1 }
 0x11d   :  { %v154_v58 = vpop.f32.mrb[1].mxu0  ;;  %v234_v59 = vpop.f32.mrb[1].mxu1 }
 0x11e   :  { %v558_v60 = vpack.c.bf16 %v732_v56, %v154_v58  ;;  %v598_v61 = vpack.c.bf16 %v756_v57, %v234_v59 }
 0x120   :  { %559 = vst [vmem:[#allocation7] sm:$0xff] %v558_v60   ;;  %642 = vst [vmem:[#allocation7 + $0x40] sm:$0xff] %v598_v61   ;;  %v735_v62 = vpop.f32.mrb[2].mxu0  ;;  %v759_v63 = vpop.f32.mrb[2].mxu1 }
 0x121   :  { %v164_v0 = vpop.f32.mrb[3].mxu0  ;;  %v244_v1 = vpop.f32.mrb[3].mxu1 }
 0x122   :  { %v563_v2 = vpack.c.bf16 %v735_v62, %v164_v0  ;;  %v603_v3 = vpack.c.bf16 %v759_v63, %v244_v1 }
 0x124   :  { %635 = vst [vmem:[#allocation7 + $0x8] sm:$0xff] %v563_v2   ;;  %643 = vst [vmem:[#allocation7 + $0x48] sm:$0xff] %v603_v3   ;;  %v738_v4 = vpop.f32.mrb[4].mxu0  ;;  %v762_v5 = vpop.f32.mrb[4].mxu1 }
 0x125   :  { %v174_v6 = vpop.f32.mrb[5].mxu0  ;;  %v254_v7 = vpop.f32.mrb[5].mxu1 }
 0x126   :  { %v568_v8 = vpack.c.bf16 %v738_v4, %v174_v6  ;;  %v608_v9 = vpack.c.bf16 %v762_v5, %v254_v7 }
 0x128   :  { %636 = vst [vmem:[#allocation7 + $0x10] sm:$0xff] %v568_v8   ;;  %644 = vst [vmem:[#allocation7 + $0x50] sm:$0xff] %v608_v9   ;;  %v741_v10 = vpop.f32.mrb[6].mxu0  ;;  %v765_v11 = vpop.f32.mrb[6].mxu1 }
 0x129   :  { %v184_v12 = vpop.f32.mrb[7].mxu0  ;;  %v264_v13 = vpop.f32.mrb[7].mxu1 }
 0x12a   :  { %v573_v14 = vpack.c.bf16 %v741_v10, %v184_v12  ;;  %v613_v15 = vpack.c.bf16 %v765_v11, %v264_v13 }
 0x12c   :  { %637 = vst [vmem:[#allocation7 + $0x18] sm:$0xff] %v573_v14   ;;  %645 = vst [vmem:[#allocation7 + $0x58] sm:$0xff] %v613_v15   ;;  %v744_v16 = vpop.f32.mrb[8].mxu0  ;;  %v768_v17 = vpop.f32.mrb[8].mxu1 }
 0x12d   :  { %v194_v18 = vpop.f32.mrb[9].mxu0  ;;  %v274_v19 = vpop.f32.mrb[9].mxu1 }
 0x12e   :  { %v578_v20 = vpack.c.bf16 %v744_v16, %v194_v18  ;;  %v618_v21 = vpack.c.bf16 %v768_v17, %v274_v19 }
 0x130   :  { %638 = vst [vmem:[#allocation7 + $0x20] sm:$0xff] %v578_v20   ;;  %646 = vst [vmem:[#allocation7 + $0x60] sm:$0xff] %v618_v21   ;;  %v747_v22 = vpop.f32.mrb[10].mxu0  ;;  %v771_v23 = vpop.f32.mrb[10].mxu1 }
 0x131   :  { %v204_v24 = vpop.f32.mrb[11].mxu0  ;;  %v284_v25 = vpop.f32.mrb[11].mxu1 }
 0x132   :  { %v583_v26 = vpack.c.bf16 %v747_v22, %v204_v24  ;;  %v623_v27 = vpack.c.bf16 %v771_v23, %v284_v25 }
 0x134   :  { %639 = vst [vmem:[#allocation7 + $0x28] sm:$0xff] %v583_v26   ;;  %647 = vst [vmem:[#allocation7 + $0x68] sm:$0xff] %v623_v27   ;;  %v750_v28 = vpop.f32.mrb[12].mxu0  ;;  %v774_v29 = vpop.f32.mrb[12].mxu1 }
 0x135   :  { %v214_v30 = vpop.f32.mrb[13].mxu0  ;;  %v294_v31 = vpop.f32.mrb[13].mxu1 }
 0x136   :  { %v588_v32 = vpack.c.bf16 %v750_v28, %v214_v30  ;;  %v628_v33 = vpack.c.bf16 %v774_v29, %v294_v31 }
 0x138   :  { %640 = vst [vmem:[#allocation7 + $0x30] sm:$0xff] %v588_v32   ;;  %648 = vst [vmem:[#allocation7 + $0x70] sm:$0xff] %v628_v33   ;;  %v753_v34 = vpop.f32.mrb[14].mxu0  ;;  %v777_v35 = vpop.f32.mrb[14].mxu1 }
 0x139   :  { %v224_v36 = vpop.f32.mrb[15].mxu0  ;;  %v304_v37 = vpop.f32.mrb[15].mxu1 }
 0x13a   :  { %v593_v38 = vpack.c.bf16 %v753_v34, %v224_v36  ;;  %v633_v39 = vpack.c.bf16 %v777_v35, %v304_v37 }
 0x13c   :  { %641 = vst [vmem:[#allocation7 + $0x38] sm:$0xff] %v593_v38   ;;  %649 = vst [vmem:[#allocation7 + $0x78] sm:$0xff] %v633_v39  }
 0x13d   :  { %888 = shalt.err (!%p885_p6)
}
 0x13e   :  { %s889_s10 = scalar_lea.hbm %s965_s2, 2048 }
 0x13f   :  { %p890_p7 = scmp.ne.s32.totalorder %s965_s2, %s889_s10  ;;  %p893_p8 = scmp.lt.u32.totalorder %s889_s10, %s965_s2 }
 0x141   :  { %p895_p9 = pnand %p893_p8, %p890_p7 }
 0x143   :  { %898 = shalt.err (!%p895_p9)
}
 0x144   :  { %s910_s15 = smov 64   ;;  %s911_s16 = smov 4  }
 0x145   :  { %484 = dma.vmem_to_hbm [thread:$0]  %s479_s6, 2048, %s965_s2, [#allocation4], %s910_s15, %s910_s15, %s911_s16  }
 0x146   :  { %903 = dma.done.wait [#allocation4], 2048  }
 0x147   :  { %904 = vsyncadd [#allocation4], 4294965248 }
 0x148   :  { %488 = vsyncpa [#allocation3], 1 }
 0x149   :  { %489 = vsyncpa [#allocation6], 1 }
 0x14a   :  { %490 = vsyncpa [#allocation4], 1 }

</bundles_post_ra>
